<compile_context>
chip_gen: v7x
topology: tpu7x:2x2x1
jax: 0.10.0
libtpu: 0.0.40
codegen_flags: <defaults>
</compile_context>

<pallas_src>
import jax
import jax.numpy as jnp
import numpy as np
from jax.experimental import pallas as pl
from jax.experimental.pallas import tpu as pltpu


def _dense_relu_kernel(x_ref, w_ref, b_ref, o_ref):
    # x_ref: (block_m, K) f32   w_ref: (K, N) bf16   b_ref: (1, N) f32
    # o_ref: (block_m, N) f32
    xb = x_ref[...].astype(jnp.bfloat16)          # bf16 MXU operands, no HBM cost
    y = jnp.dot(xb, w_ref[...], preferred_element_type=jnp.float32)
    y = y + b_ref[...]                            # f32 epilogue
    o_ref[...] = jnp.maximum(y, 0.0).astype(o_ref.dtype)


def prepare_dense_params(w, b):
    """One-time parameter reshuffle (outside the per-forward hot path).

    w: (out_features, in_features)  PyTorch nn.Linear layout
    b: (out_features,)
    returns: wt (in, out) bf16, b2 (1, out) f32
    """
    wt = jnp.asarray(w).T.astype(jnp.bfloat16)
    b2 = jnp.asarray(b, jnp.float32).reshape(1, -1)
    return wt, b2


def _choose_block_m(M, K, N):
    # Tiny batch: one tile, one grid step (no pointless split).
    if M <= 1024:
        return M
    # HBM-bound kernel: pick the biggest row tile whose double-buffered
    # f32 x-tile + f32 out-tile stays within ~12 MiB (safe at v5e's 16 MiB
    # scoped default; comfortable headroom under v7x's 64 MiB physical VMEM).
    budget = 12 * 1024 * 1024
    per_row = 2 * 4 * (K + N)              # double-buffered f32 in + f32 out
    bm = budget // per_row
    bm = int(max(512, min(bm, 8192)))
    bm = (bm // 8) * 8                     # sublane multiple
    return bm


def _vmem_limit_bytes(block_m, K, N):
    # Double-buffered x (f32) + out (f32) + weight (bf16) + bias (f32), 2x margin.
    need = 2 * (block_m * K * 4 + block_m * N * 4 + K * N * 2 + N * 4)
    return int(min(max(32 * 1024 * 1024, 2 * need), 56 * 1024 * 1024))


def dense_block(x, wt, b2, *, block_m=None):
    """DenseBlock forward: relu(x @ wt + b2).

    x:  (B, in_features) float32
    wt: (in_features, out_features) bfloat16   (from prepare_dense_params)
    b2: (1, out_features) float32
    returns: (B, out_features) float32
    """
    M, K = x.shape
    Kw, N = wt.shape
    assert K == Kw, "weight/in_features mismatch"

    if block_m is None:
        block_m = _choose_block_m(M, K, N)
    block_m = min(block_m, M)

    grid = (pl.cdiv(M, block_m),)          # ragged last tile is masked by Pallas

    return pl.pallas_call(
        _dense_relu_kernel,
        out_shape=jax.ShapeDtypeStruct((M, N), jnp.float32),
        grid_spec=pltpu.PrefetchScalarGridSpec(
            num_scalar_prefetch=0,
            grid=grid,
            in_specs=[
                pl.BlockSpec((block_m, K), lambda i: (i, 0)),
                pl.BlockSpec((K, N), lambda i: (0, 0)),
                pl.BlockSpec((1, N), lambda i: (0, 0)),
            ],
            out_specs=pl.BlockSpec((block_m, N), lambda i: (i, 0)),
        ),
        compiler_params=pltpu.CompilerParams(
            dimension_semantics=("parallel",),
            vmem_limit_bytes=_vmem_limit_bytes(block_m, K, N),
        ),
    )(x, wt, b2)


def _reference(x, w, b):
    """Pure-JAX f32 reference mirroring the PyTorch forward (defaults)."""
    y = jnp.dot(x, w.T, preferred_element_type=jnp.float32) + b[None, :]
    return jnp.maximum(y, 0.0)


if __name__ == "__main__":
    # DenseBlock(in_features=64, out_features=128, activation='relu',
    #            use_batch_norm=False, dropout_rate=0.0)
    B, IN, OUT = 16, 64, 128

    key = jax.random.PRNGKey(0)
    k1, k2, k3 = jax.random.split(key, 3)
    x = jax.random.normal(k1, (B, IN), jnp.float32)
    w = jax.random.normal(k2, (OUT, IN), jnp.float32) * (1.0 / np.sqrt(IN))
    b = jax.random.normal(k3, (OUT,), jnp.float32) * 0.1

    # One-time parameter prep (outside the hot path).
    wt, b2 = prepare_dense_params(w, b)

    out = jax.block_until_ready(dense_block(x, wt, b2))
    ref = jax.block_until_ready(_reference(x, w, b))
    # bf16 MXU operands (f32 accumulation) -> loosened tolerance vs pure f32.
    np.testing.assert_allclose(np.asarray(out), np.asarray(ref),
                               rtol=2e-2, atol=2e-2)

    print("KERNEL_OK")
</pallas_src>

<mosaic_0001>
module attributes {stable_mosaic.version = 11 : i64} {
  func.func @_dense_relu_kernel(%arg0: i32, %arg1: memref<16x64xf32, #tpu.memory_space<vmem>>, %arg2: memref<64x128xbf16, #tpu.memory_space<vmem>>, %arg3: memref<1x128xf32, #tpu.memory_space<vmem>>, %arg4: memref<16x128xf32, #tpu.memory_space<vmem>>) attributes {dimension_semantics = [#tpu.dimension_semantics<parallel>], iteration_bounds = array<i64: 1>, scalar_prefetch = 0 : i64, scratch_operands = 0 : i64, tpu.core_type = #tpu.core_type<tc>, window_params = [{transform_indices = @transform_0, window_bounds = array<i64: 16, 64>}, {pipeline_mode = #tpu.pipeline_mode<synchronous>, transform_indices = @transform_1, window_bounds = array<i64: 64, 128>}, {pipeline_mode = #tpu.pipeline_mode<synchronous>, transform_indices = @transform_2, window_bounds = array<i64: 1, 128>}, {transform_indices = @transform_3, window_bounds = array<i64: 16, 128>}]} {
    %c0 = arith.constant 0 : index
    %c0_0 = arith.constant 0 : index
    %0 = vector.load %arg1[%c0, %c0_0] : memref<16x64xf32, #tpu.memory_space<vmem>>, vector<16x64xf32>
    %1 = arith.truncf %0 : vector<16x64xf32> to vector<16x64xbf16>
    %c0_1 = arith.constant 0 : index
    %c0_2 = arith.constant 0 : index
    %2 = vector.load %arg2[%c0_1, %c0_2] : memref<64x128xbf16, #tpu.memory_space<vmem>>, vector<64x128xbf16>
    %cst = arith.constant dense<0.000000e+00> : vector<16x128xf32>
    %3 = tpu.matmul %1, %2, %cst {dimension_numbers = #tpu.dot_dimension_numbers<[1], [0], [0], [1], [0, 0, 1, 1], [], []>} : vector<16x64xbf16>, vector<64x128xbf16>, vector<16x128xf32> -> vector<16x128xf32>
    %c0_3 = arith.constant 0 : index
    %c0_4 = arith.constant 0 : index
    %4 = vector.load %arg3[%c0_3, %c0_4] : memref<1x128xf32, #tpu.memory_space<vmem>>, vector<1x128xf32>
    %5 = vector.broadcast %4 : vector<1x128xf32> to vector<16x128xf32>
    %6 = arith.addf %3, %5 : vector<16x128xf32>
    %cst_5 = arith.constant 0.000000e+00 : f32
    %7 = vector.broadcast %cst_5 : f32 to vector<16x128xf32>
    %8 = arith.maximumf %6, %7 : vector<16x128xf32>
    %c0_6 = arith.constant 0 : index
    %c0_7 = arith.constant 0 : index
    %9 = vector.load %arg4[%c0_6, %c0_7] : memref<16x128xf32, #tpu.memory_space<vmem>>, vector<16x128xf32>
    tpu.vector_store %arg4[%c0_6, %c0_7], %8 {strides = array<i32>} : memref<16x128xf32, #tpu.memory_space<vmem>>, vector<16x128xf32>,
    return
  }
  func.func @transform_0(%arg0: i32) -> (i32, i32) {
    %c0_i32 = arith.constant 0 : i32
    %c0_i32_0 = arith.constant 0 : i32
    return %arg0, %c0_i32 : i32, i32
  }
  func.func @transform_1(%arg0: i32) -> (i32, i32) {
    %c0_i32 = arith.constant 0 : i32
    %c0_i32_0 = arith.constant 0 : i32
    %c0_i32_1 = arith.constant 0 : i32
    return %c0_i32, %c0_i32_0 : i32, i32
  }
  func.func @transform_2(%arg0: i32) -> (i32, i32) {
    %c0_i32 = arith.constant 0 : i32
    %c0_i32_0 = arith.constant 0 : i32
    %c0_i32_1 = arith.constant 0 : i32
    return %c0_i32, %c0_i32_0 : i32, i32
  }
  func.func @transform_3(%arg0: i32) -> (i32, i32) {
    %c0_i32 = arith.constant 0 : i32
    %c0_i32_0 = arith.constant 0 : i32
    return %arg0, %c0_i32 : i32, i32
  }
}

</mosaic_0001>

<bundles_post_ra>
// kernel: tpu_custom_call.1
= control target key start
LH: loop header
LB: loop body
LE: loop exit
PB: predicated region body
PF: predicated region fallthrough
CT: control target
= control target key end

     0   :  { %8 = vsyncpa [#allocation3], 0  ;;  %s335_s0 = inlined_call_operand.hbm [shape: f32[16,64], index: 0, kind: input, shape index: {}]   ;;  %s336_s1 = inlined_call_operand.hbm [shape: bf16[64,128], index: 1, kind: input, shape index: {}]   ;;  %s337_s2 = inlined_call_operand.vmem [shape: f32[1,128], index: 2, kind: input, shape index: {}]   ;;  %s338_s3 = inlined_call_operand.hbm [shape: f32[16,128], index: 3, kind: output, shape index: {}]  }
   0x1   :  { %9 = vsyncpa [#allocation6], 0 }
   0x2   :  { %10 = vsyncpa [#allocation4], 0  ;;  %s261_s12 = smov [#allocation2]   ;;  %s189_s16 = scalar_lea.hbm %s335_s0, 256 }
   0x3   :  { %s16_s13 = sshll.u32 %s261_s12, 4  ;;  %p190_p0 = scmp.ne.s32.totalorder %s335_s0, %s189_s16  ;;  %s17_s13 = int_to_ptr.vmem [resolvable:$true] %s16_s13 }
   0x4   :  { %p193_p1 = scmp.lt.u32.totalorder %s189_s16, %s335_s0 }
   0x6   :  { %p195_p2 = pnand %p193_p1, %p190_p0 }
   0x8   :  { %198 = shalt.err (!%p195_p2)
}
   0x9   :  { %s199_s21 = scalar_lea.vmem %s17_s13, 256  ;;  %p204_p4 = scmp.lt.s32.totalorder %s17_s13, %s17_s13 }
   0xa   :  { %p200_p3 = scmp.ne.s32.totalorder %s17_s13, %s199_s21  ;;  %p205_p5 = scmp.lt.s32.totalorder %s199_s21, %s199_s21 }
   0xc   :  { %p206_p6 = por %p205_p5, %p204_p4 }
   0xe   :  { %p207_p7 = pnand %p206_p6, %p200_p3 }
  0x10   :  { %210 = shalt.err (!%p207_p7)
}
  0x11   :  { %s262_s22 = smov 128   ;;  %s263_s23 = smov 8  }
  0x12   :  { %22 = dma.hbm_to_vmem [thread:$0]  %s335_s0, 256, %s17_s13, [#allocation3], %s262_s22, %s262_s22, %s263_s23  }
  0x13   :  { %s264_s26 = smov [#allocation5]   ;;  %s211_s30 = scalar_lea.hbm %s336_s1, 512 }
  0x14   :  { %s28_s27 = sshll.u32 %s264_s26, 4  ;;  %p212_p8 = scmp.ne.s32.totalorder %s336_s1, %s211_s30  ;;  %s29_s27 = int_to_ptr.vmem [resolvable:$true] %s28_s27 }
  0x15   :  { %p215_p9 = scmp.lt.u32.totalorder %s211_s30, %s336_s1 }
  0x17   :  { %p217_p10 = pnand %p215_p9, %p212_p8 }
  0x19   :  { %220 = shalt.err (!%p217_p10)
}
  0x1a   :  { %s221_s8 = scalar_lea.vmem %s29_s27, 512  ;;  %p226_p12 = scmp.lt.s32.totalorder %s29_s27, %s29_s27 }
  0x1b   :  { %p222_p11 = scmp.ne.s32.totalorder %s29_s27, %s221_s8  ;;  %p227_p13 = scmp.lt.s32.totalorder %s221_s8, %s221_s8 }
  0x1d   :  { %p228_p0 = por %p227_p13, %p226_p12 }
  0x1f   :  { %p229_p1 = pnand %p228_p0, %p222_p11 }
  0x21   :  { %232 = shalt.err (!%p229_p1)
}
  0x22   :  { %s265_s0 = smov 64   ;;  %s266_s9 = smov 4  }
  0x23   :  { %34 = dma.hbm_to_vmem [thread:$0]  %s336_s1, 512, %s29_s27, [#allocation6], %s265_s0, %s265_s0, %s266_s9  }
  0x24   :  { %255 = dma.done.wait [#allocation3], 256  }
  0x25   :  { %256 = vsyncadd [#allocation3], 4294967040 }
  0x26   :  { %257 = dma.done.wait [#allocation6], 512  }
  0x27   :  { %258 = vsyncadd [#allocation6], 4294966784  ;;  %v267_v0 = vmov 0.0   ;;  %vm268_vm0 = vmmov 0   ;;  %v185_v1 = vld [vmem:[#allocation5] sm:$0xff]   ;;  %v186_v2 = vld [vmem:[#allocation5 + $0x8] sm:$0xff]  }
  0x28   :  { %164 = vmatprep.subr.bf16.mxu0 %v267_v0  ;;  %172 = vmatprep.mubr.msk.bf16.mxu0 %vm268_vm0, %v267_v0  ;;  %v187_v3 = vld [vmem:[#allocation5 + $0x10] sm:$0xff]   ;;  %v188_v4 = vld [vmem:[#allocation5 + $0x18] sm:$0xff]   ;;  %vm86_vm1 = vcmask 523264   ;;  %s269_s13 = smov [#allocation7]  }
  0x29   :  { %165 = vmatpush3.bf16.msra.mxu0 %v185_v1  ;;  %v44_v5 = vld [vmem:[#allocation2] sm:$0xff]  ;;  %v45_v6 = vld [vmem:[#allocation2 + $0x8] sm:$0xff]  ;;  %s140_s14 = sshll.u32 %s269_s13, 4  ;;  %s141_s14 = int_to_ptr.vmem [resolvable:$true] %s140_s14 }
  0x2a   :  { %166 = vmatprep.subr.bf16.mxu0 %v267_v0  ;;  %v46_v7 = vpack.c.bf16 %v45_v6, %v44_v5  ;;  %v153_v8 = vld [vmem:[%s337_s2] ss:$0 sm:$0xff]  ;;  %s233_s15 = scalar_lea.vmem %s141_s14, 256  ;;  %p238_p3 = scmp.lt.s32.totalorder %s141_s14, %s141_s14 }
  0x2b   :  { %p234_p2 = scmp.ne.s32.totalorder %s141_s14, %s233_s15  ;;  %p239_p4 = scmp.lt.s32.totalorder %s233_s15, %s233_s15 }
  0x2d   :  { %167 = vmatpush3.bf16.msra.mxu0 %v186_v2  ;;  %p240_p5 = por %p239_p4, %p238_p3 }
  0x2e   :  { %168 = vmatprep.subr.bf16.mxu0 %v267_v0 }
  0x2f   :  { %p241_p6 = pnand %p240_p5, %p234_p2 }
  0x31   :  { %169 = vmatpush3.bf16.msra.mxu0 %v187_v3 }
  0x32   :  { %170 = vmatprep.subr.bf16.mxu0 %v267_v0 }
  0x35   :  { %171 = vmatpush3.bf16.msra.mxu0 %v188_v4 }
  0x38   :  { %173 = vmatmul.mubr.msk.bf16.vlgmr.msra.gmra.mrb[0].mxu0 %vm86_vm1, %v46_v7 }
 0x10b   :  { %v124_v9 = vpop.f32.mrb[0].mxu0 }
 0x10c   :  { %v125_v10 = vadd.f32 %v153_v8, %v124_v9  ;;  %v174_v11 = vpop.f32.mrb[1].mxu0 }
 0x10d   :  { %v127_v12 = vpop.f32.mrb[2].mxu0 }
 0x10e   :  { %v131_v13 = vmax.f32 %v125_v10, 0.0  ;;  %v128_v14 = vadd.f32 %v153_v8, %v127_v12  ;;  %v175_v15 = vpop.f32.mrb[3].mxu0 }
 0x110   :  { %133 = vst [vmem:[#allocation7] sm:$0xff] %v131_v13  ;;  %v132_v16 = vmax.f32 %v128_v14, 0.0 }
 0x112   :  { %134 = vst [vmem:[#allocation7 + $0x8] sm:$0xff] %v132_v16 }
 0x113   :  { %244 = shalt.err (!%p241_p6)
}
 0x114   :  { %s245_s17 = scalar_lea.hbm %s338_s3, 256 }
 0x115   :  { %p246_p7 = scmp.ne.s32.totalorder %s338_s3, %s245_s17  ;;  %p249_p8 = scmp.lt.u32.totalorder %s245_s17, %s338_s3 }
 0x117   :  { %p251_p9 = pnand %p249_p8, %p246_p7 }
 0x119   :  { %254 = shalt.err (!%p251_p9)
}
 0x11a   :  { %146 = dma.vmem_to_hbm [thread:$0]  %s141_s14, 256, %s338_s3, [#allocation4], %s262_s22, %s262_s22, %s263_s23  }
 0x11b   :  { %259 = dma.done.wait [#allocation4], 256  }
 0x11c   :  { %260 = vsyncadd [#allocation4], 4294967040 }
 0x11d   :  { %150 = vsyncpa [#allocation3], 1 }
 0x11e   :  { %151 = vsyncpa [#allocation6], 1 }
 0x11f   :  { %152 = vsyncpa [#allocation4], 1 }

</bundles_post_ra>
